<compile_context>
chip_gen: v5e
topology: v5e:2x2
jax: 0.10.0
libtpu: 0.0.40
codegen_flags: <defaults>
</compile_context>

<pallas_src>
import math

import jax
import jax.numpy as jnp
import numpy as np
from jax.experimental import pallas as pl
from jax.experimental.pallas import tpu as pltpu

_K = 3          # temporal kernel size
_BN_EPS = 1e-5


# ------------------------------------------------------------ fused kernel
def _stgcn_block_kernel(x_ref, ablk_ref, w1a_ref, w1b_ref, b1a_ref, b1b_ref,
                        thblk_ref, w2a_ref, w2b_ref, b2a_ref, b2b_ref,
                        g_ref, be_ref, o_ref):
    N = g_ref.shape[0]
    B = x_ref.shape[0] // N

    x = x_ref[...]                                              # (B*N, T*Cin)

    # ---- TimeBlock 1: relu( x conv (W1+W3) + sigmoid(x conv W2) )
    za = jnp.dot(x, w1a_ref[...], preferred_element_type=jnp.float32) + b1a_ref[...]
    zb = jnp.dot(x, w1b_ref[...], preferred_element_type=jnp.float32) + b1b_ref[...]
    h1 = jnp.maximum(za + jax.nn.sigmoid(zb), 0.0)              # (B*N, T1*Cout)

    # ---- graph conv: block-diagonal A_hat mixes node rows within each batch
    lfs = jnp.dot(ablk_ref[...], h1, preferred_element_type=jnp.float32)

    # ---- Theta (block-diagonal over time) + relu
    t2 = jnp.maximum(
        jnp.dot(lfs, thblk_ref[...], preferred_element_type=jnp.float32), 0.0)

    # ---- TimeBlock 2
    ya = jnp.dot(t2, w2a_ref[...], preferred_element_type=jnp.float32) + b2a_ref[...]
    yb = jnp.dot(t2, w2b_ref[...], preferred_element_type=jnp.float32) + b2b_ref[...]
    h2 = jnp.maximum(ya + jax.nn.sigmoid(yb), 0.0)              # (B*N, T2*Cout)

    # ---- BatchNorm2d(num_nodes): training-mode batch stats per node over
    #      (batch, T2, Cout), computed in a single pass (E[x^2] - mean^2).
    L = h2.shape[1]                                             # T2*Cout
    row_sum = jnp.sum(h2, axis=1, keepdims=True)                # (B*N, 1)
    row_sq = jnp.sum(h2 * h2, axis=1, keepdims=True)            # (B*N, 1)
    node_sum = row_sum[0:N]
    node_sq = row_sq[0:N]
    for b in range(1, B):                                       # B tiny & static
        node_sum = node_sum + row_sum[b * N:(b + 1) * N]
        node_sq = node_sq + row_sq[b * N:(b + 1) * N]
    inv_cnt = 1.0 / float(B * L)
    mean = node_sum * inv_cnt                                   # (N, 1)
    var = node_sq * inv_cnt - mean * mean                       # biased variance
    inv = jax.lax.rsqrt(jnp.maximum(var, 0.0) + _BN_EPS)
    scale = g_ref[...] * inv                                    # (N, 1)
    shift = be_ref[...] - mean * scale                          # (N, 1)

    # ---- lane-dense stores: (N, T2*Cout) = (16, 128) per batch
    for b in range(B):
        o_ref[b * N:(b + 1) * N, :] = (
            h2[b * N:(b + 1) * N, :] * scale + shift).astype(o_ref.dtype)


# ------------------------------------------------------------------ wrapper
def _banded_conv_weight(w, t_in):
    """(K, Cin, Cout) conv taps -> banded (t_in*Cin, t_out*Cout) matmul weight
    acting on a time-major/channel-minor lane-dense activation row."""
    K, Cin, Cout = w.shape
    t_out = t_in - K + 1
    ti = jnp.arange(t_in)[:, None]                 # input time index
    to = jnp.arange(t_out)[None, :]                # output time index
    k_idx = ti - to                                # (t_in, t_out)
    valid = (k_idx >= 0) & (k_idx < K)
    taps = w.astype(jnp.float32)[jnp.clip(k_idx, 0, K - 1)]   # (t_in, t_out, Cin, Cout)
    banded = jnp.where(valid[:, :, None, None], taps, 0.0)
    return jnp.transpose(banded, (0, 2, 1, 3)).reshape(t_in * Cin, t_out * Cout)


def _timeblock_weights(tb_params, t_in):
    w1, w2, w3, b1, b2, b3 = tb_params
    t_out = t_in - _K + 1
    wa = _banded_conv_weight(w1 + w3, t_in)        # linear path: conv1 + conv3
    wb = _banded_conv_weight(w2, t_in)             # gate path:   conv2
    ba = jnp.tile((b1 + b3).astype(jnp.float32), t_out)[None, :]
    bb = jnp.tile(b2.astype(jnp.float32), t_out)[None, :]
    return wa, wb, ba, bb


def stgcn_block_forward(x, a_hat, params):
    B, N, T, Cin = x.shape
    Cout, Csp = params["theta"].shape
    T1 = T - (_K - 1)
    T2 = T1 - (_K - 1)

    # lane-dense, contiguous input rows: one row per (batch, node)
    x_flat = x.reshape(B * N, T * Cin).astype(jnp.float32)
    # block-diagonal adjacency applies A_hat to every batch in one matmul
    a_blk = jnp.kron(jnp.eye(B, dtype=jnp.float32), a_hat.astype(jnp.float32))
    w1a, w1b, b1a, b1b = _timeblock_weights(params["tb1"], T)
    w2a, w2b, b2a, b2b = _timeblock_weights(params["tb2"], T1)
    # block-diagonal Theta applies the (Cout, Csp) mix per time step in one matmul
    theta_blk = jnp.kron(jnp.eye(T1, dtype=jnp.float32),
                         params["theta"].astype(jnp.float32))
    gamma = params["gamma"].reshape(N, 1).astype(jnp.float32)
    beta = params["beta"].reshape(N, 1).astype(jnp.float32)

    vmem = pl.BlockSpec(memory_space=pltpu.MemorySpace.VMEM)
    out = pl.pallas_call(
        _stgcn_block_kernel,
        out_shape=jax.ShapeDtypeStruct((B * N, T2 * Cout), x.dtype),
        in_specs=[vmem] * 13,
        out_specs=vmem,
    )(x_flat, a_blk, w1a, w1b, b1a, b1b, theta_blk, w2a, w2b, b2a, b2b,
      gamma, beta)
    return out.reshape(B, N, T2, Cout)


# ------------------------------------------------------------- pure-JAX ref
def _time_block_ref(x, w1, w2, w3, b1, b2, b3):
    K = w1.shape[0]
    T1 = x.shape[2] - K + 1

    def conv(w, b):
        acc = jnp.zeros(x.shape[:2] + (T1, w.shape[2]), jnp.float32)
        for k in range(K):
            acc = acc + jnp.einsum("bntc,cd->bntd", x[:, :, k:k + T1, :], w[k])
        return acc + b

    c1, c2, c3 = conv(w1, b1), conv(w2, b2), conv(w3, b3)
    return jnp.maximum(c1 + jax.nn.sigmoid(c2) + c3, 0.0)


def stgcn_block_ref(x, a_hat, params):
    t = _time_block_ref(x, *params["tb1"])
    lfs = jnp.einsum("ij,bjlm->bilm", a_hat, t)
    t2 = jnp.maximum(lfs @ params["theta"], 0.0)
    t3 = _time_block_ref(t2, *params["tb2"])
    mean = jnp.mean(t3, axis=(0, 2, 3), keepdims=True)
    var = jnp.mean((t3 - mean) ** 2, axis=(0, 2, 3), keepdims=True)
    g = params["gamma"].reshape(1, -1, 1, 1)
    b = params["beta"].reshape(1, -1, 1, 1)
    return g * (t3 - mean) / jnp.sqrt(var + _BN_EPS) + b


# ---------------------------------------------------------------- param init
def _init_conv(key, cin, cout, K=3):
    # PyTorch Conv2d default init (kaiming_uniform a=sqrt(5) -> uniform(+-1/sqrt(fan_in)))
    k1, k2 = jax.random.split(key)
    fan_in = cin * K
    bound = 1.0 / math.sqrt(fan_in)
    w_pt = jax.random.uniform(k1, (cout, cin, 1, K), jnp.float32, -bound, bound)
    b = jax.random.uniform(k2, (cout,), jnp.float32, -bound, bound)
    w = jnp.transpose(w_pt[:, :, 0, :], (2, 1, 0))        # (K, Cin, Cout)
    return w, b


if __name__ == "__main__":
    B, N, T = 2, 16, 12
    C_in, C_sp, C_out = 4, 8, 16

    key = jax.random.PRNGKey(0)
    ks = jax.random.split(key, 12)

    x = jax.random.normal(ks[0], (B, N, T, C_in), jnp.float32)

    # deterministic normalized adjacency A_hat = D^{-1/2} (A + I) D^{-1/2}
    adj = (jax.random.uniform(ks[1], (N, N)) > 0.7).astype(jnp.float32)
    adj = jnp.maximum(adj, adj.T) + jnp.eye(N, dtype=jnp.float32)
    dinv = 1.0 / jnp.sqrt(jnp.sum(adj, axis=1))
    a_hat = adj * dinv[:, None] * dinv[None, :]

    w11, b11 = _init_conv(ks[2], C_in, C_out)
    w12, b12 = _init_conv(ks[3], C_in, C_out)
    w13, b13 = _init_conv(ks[4], C_in, C_out)
    w21, b21 = _init_conv(ks[5], C_sp, C_out)
    w22, b22 = _init_conv(ks[6], C_sp, C_out)
    w23, b23 = _init_conv(ks[7], C_sp, C_out)

    stdv = 1.0 / math.sqrt(C_sp)
    theta = jax.random.uniform(ks[8], (C_out, C_sp), jnp.float32, -stdv, stdv)

    params = {
        "tb1": (w11, w12, w13, b11, b12, b13),
        "tb2": (w21, w22, w23, b21, b22, b23),
        "theta": theta,
        "gamma": jnp.ones((N,), jnp.float32),   # BatchNorm2d default affine params
        "beta": jnp.zeros((N,), jnp.float32),
    }

    fwd = jax.jit(stgcn_block_forward)
    out = jax.block_until_ready(fwd(x, a_hat, params))
    ref = jax.block_until_ready(stgcn_block_ref(x, a_hat, params))

    assert out.shape == (B, N, T - 4, C_out), out.shape
    np.testing.assert_allclose(np.asarray(out), np.asarray(ref), rtol=2e-2, atol=2e-2)
    print("KERNEL_OK")
</pallas_src>

<mosaic_0001>
module attributes {stable_mosaic.version = 11 : i64} {
  func.func @_stgcn_block_kernel(%arg0: memref<32x48xf32, #tpu.memory_space<vmem>>, %arg1: memref<32x32xf32, #tpu.memory_space<vmem>>, %arg2: memref<48x160xf32, #tpu.memory_space<vmem>>, %arg3: memref<48x160xf32, #tpu.memory_space<vmem>>, %arg4: memref<1x160xf32, #tpu.memory_space<vmem>>, %arg5: memref<1x160xf32, #tpu.memory_space<vmem>>, %arg6: memref<160x80xf32, #tpu.memory_space<vmem>>, %arg7: memref<80x128xf32, #tpu.memory_space<vmem>>, %arg8: memref<80x128xf32, #tpu.memory_space<vmem>>, %arg9: memref<1x128xf32, #tpu.memory_space<vmem>>, %arg10: memref<1x128xf32, #tpu.memory_space<vmem>>, %arg11: memref<16x1xf32, #tpu.memory_space<vmem>>, %arg12: memref<16x1xf32, #tpu.memory_space<vmem>>, %arg13: memref<32x128xf32, #tpu.memory_space<vmem>>) attributes {dimension_semantics = [], scalar_prefetch = 0 : i64, scratch_operands = 0 : i64, tpu.core_type = #tpu.core_type<tc>} {
    %c0 = arith.constant 0 : index
    %c0_0 = arith.constant 0 : index
    %0 = vector.load %arg0[%c0, %c0_0] : memref<32x48xf32, #tpu.memory_space<vmem>>, vector<32x48xf32>
    %c0_1 = arith.constant 0 : index
    %c0_2 = arith.constant 0 : index
    %1 = vector.load %arg2[%c0_1, %c0_2] : memref<48x160xf32, #tpu.memory_space<vmem>>, vector<48x160xf32>
    %cst = arith.constant dense<0.000000e+00> : vector<32x160xf32>
    %2 = tpu.matmul %0, %1, %cst {dimension_numbers = #tpu.dot_dimension_numbers<[1], [0], [0], [1], [0, 0, 1, 1], [], []>} : vector<32x48xf32>, vector<48x160xf32>, vector<32x160xf32> -> vector<32x160xf32>
    %c0_3 = arith.constant 0 : index
    %c0_4 = arith.constant 0 : index
    %3 = vector.load %arg4[%c0_3, %c0_4] : memref<1x160xf32, #tpu.memory_space<vmem>>, vector<1x160xf32>
    %4 = vector.broadcast %3 : vector<1x160xf32> to vector<32x160xf32>
    %5 = arith.addf %2, %4 : vector<32x160xf32>
    %c0_5 = arith.constant 0 : index
    %c0_6 = arith.constant 0 : index
    %6 = vector.load %arg3[%c0_5, %c0_6] : memref<48x160xf32, #tpu.memory_space<vmem>>, vector<48x160xf32>
    %cst_7 = arith.constant dense<0.000000e+00> : vector<32x160xf32>
    %7 = tpu.matmul %0, %6, %cst_7 {dimension_numbers = #tpu.dot_dimension_numbers<[1], [0], [0], [1], [0, 0, 1, 1], [], []>} : vector<32x48xf32>, vector<48x160xf32>, vector<32x160xf32> -> vector<32x160xf32>
    %c0_8 = arith.constant 0 : index
    %c0_9 = arith.constant 0 : index
    %8 = vector.load %arg5[%c0_8, %c0_9] : memref<1x160xf32, #tpu.memory_space<vmem>>, vector<1x160xf32>
    %9 = vector.broadcast %8 : vector<1x160xf32> to vector<32x160xf32>
    %10 = arith.addf %7, %9 : vector<32x160xf32>
    %11 = arith.negf %10 : vector<32x160xf32>
    %12 = math.exp %11 : vector<32x160xf32>
    %cst_10 = arith.constant 1.000000e+00 : f32
    %13 = vector.broadcast %cst_10 : f32 to vector<32x160xf32>
    %14 = arith.addf %13, %12 : vector<32x160xf32>
    %15 = arith.divf %13, %14 : vector<32x160xf32>
    %16 = arith.addf %5, %15 : vector<32x160xf32>
    %cst_11 = arith.constant 0.000000e+00 : f32
    %17 = vector.broadcast %cst_11 : f32 to vector<32x160xf32>
    %18 = arith.maximumf %16, %17 : vector<32x160xf32>
    %c0_12 = arith.constant 0 : index
    %c0_13 = arith.constant 0 : index
    %19 = vector.load %arg1[%c0_12, %c0_13] : memref<32x32xf32, #tpu.memory_space<vmem>>, vector<32x32xf32>
    %cst_14 = arith.constant dense<0.000000e+00> : vector<32x160xf32>
    %20 = tpu.matmul %19, %18, %cst_14 {dimension_numbers = #tpu.dot_dimension_numbers<[1], [0], [0], [1], [0, 0, 1, 1], [], []>} : vector<32x32xf32>, vector<32x160xf32>, vector<32x160xf32> -> vector<32x160xf32>
    %c0_15 = arith.constant 0 : index
    %c0_16 = arith.constant 0 : index
    %21 = vector.load %arg6[%c0_15, %c0_16] : memref<160x80xf32, #tpu.memory_space<vmem>>, vector<160x80xf32>
    %cst_17 = arith.constant dense<0.000000e+00> : vector<32x80xf32>
    %22 = tpu.matmul %20, %21, %cst_17 {dimension_numbers = #tpu.dot_dimension_numbers<[1], [0], [0], [1], [0, 0, 1, 1], [], []>} : vector<32x160xf32>, vector<160x80xf32>, vector<32x80xf32> -> vector<32x80xf32>
    %cst_18 = arith.constant 0.000000e+00 : f32
    %23 = vector.broadcast %cst_18 : f32 to vector<32x80xf32>
    %24 = arith.maximumf %22, %23 : vector<32x80xf32>
    %c0_19 = arith.constant 0 : index
    %c0_20 = arith.constant 0 : index
    %25 = vector.load %arg7[%c0_19, %c0_20] : memref<80x128xf32, #tpu.memory_space<vmem>>, vector<80x128xf32>
    %cst_21 = arith.constant dense<0.000000e+00> : vector<32x128xf32>
    %26 = tpu.matmul %24, %25, %cst_21 {dimension_numbers = #tpu.dot_dimension_numbers<[1], [0], [0], [1], [0, 0, 1, 1], [], []>} : vector<32x80xf32>, vector<80x128xf32>, vector<32x128xf32> -> vector<32x128xf32>
    %c0_22 = arith.constant 0 : index
    %c0_23 = arith.constant 0 : index
    %27 = vector.load %arg9[%c0_22, %c0_23] : memref<1x128xf32, #tpu.memory_space<vmem>>, vector<1x128xf32>
    %28 = vector.broadcast %27 : vector<1x128xf32> to vector<32x128xf32>
    %29 = arith.addf %26, %28 : vector<32x128xf32>
    %c0_24 = arith.constant 0 : index
    %c0_25 = arith.constant 0 : index
    %30 = vector.load %arg8[%c0_24, %c0_25] : memref<80x128xf32, #tpu.memory_space<vmem>>, vector<80x128xf32>
    %cst_26 = arith.constant dense<0.000000e+00> : vector<32x128xf32>
    %31 = tpu.matmul %24, %30, %cst_26 {dimension_numbers = #tpu.dot_dimension_numbers<[1], [0], [0], [1], [0, 0, 1, 1], [], []>} : vector<32x80xf32>, vector<80x128xf32>, vector<32x128xf32> -> vector<32x128xf32>
    %c0_27 = arith.constant 0 : index
    %c0_28 = arith.constant 0 : index
    %32 = vector.load %arg10[%c0_27, %c0_28] : memref<1x128xf32, #tpu.memory_space<vmem>>, vector<1x128xf32>
    %33 = vector.broadcast %32 : vector<1x128xf32> to vector<32x128xf32>
    %34 = arith.addf %31, %33 : vector<32x128xf32>
    %35 = arith.negf %34 : vector<32x128xf32>
    %36 = math.exp %35 : vector<32x128xf32>
    %cst_29 = arith.constant 1.000000e+00 : f32
    %37 = vector.broadcast %cst_29 : f32 to vector<32x128xf32>
    %38 = arith.addf %37, %36 : vector<32x128xf32>
    %39 = arith.divf %37, %38 : vector<32x128xf32>
    %40 = arith.addf %29, %39 : vector<32x128xf32>
    %cst_30 = arith.constant 0.000000e+00 : f32
    %41 = vector.broadcast %cst_30 : f32 to vector<32x128xf32>
    %42 = arith.maximumf %40, %41 : vector<32x128xf32>
    %cst_31 = arith.constant dense<0.000000e+00> : vector<32xf32>
    %43 = vector.multi_reduction <add>, %42, %cst_31 [1] : vector<32x128xf32> to vector<32xf32>
    %44 = vector.shape_cast %43 : vector<32xf32> to vector<32x1xf32>
    %45 = arith.mulf %42, %42 : vector<32x128xf32>
    %cst_32 = arith.constant dense<0.000000e+00> : vector<32xf32>
    %46 = vector.multi_reduction <add>, %45, %cst_32 [1] : vector<32x128xf32> to vector<32xf32>
    %47 = vector.shape_cast %46 : vector<32xf32> to vector<32x1xf32>
    %48 = vector.extract_strided_slice %44 {offsets = [0, 0], sizes = [16, 1], strides = [1, 1]} : vector<32x1xf32> to vector<16x1xf32>
    %49 = vector.extract_strided_slice %47 {offsets = [0, 0], sizes = [16, 1], strides = [1, 1]} : vector<32x1xf32> to vector<16x1xf32>
    %50 = vector.extract_strided_slice %44 {offsets = [16, 0], sizes = [16, 1], strides = [1, 1]} : vector<32x1xf32> to vector<16x1xf32>
    %51 = arith.addf %48, %50 : vector<16x1xf32>
    %52 = vector.extract_strided_slice %47 {offsets = [16, 0], sizes = [16, 1], strides = [1, 1]} : vector<32x1xf32> to vector<16x1xf32>
    %53 = arith.addf %49, %52 : vector<16x1xf32>
    %cst_33 = arith.constant 3.906250e-03 : f32
    %54 = vector.broadcast %cst_33 : f32 to vector<16x1xf32>
    %55 = arith.mulf %51, %54 : vector<16x1xf32>
    %cst_34 = arith.constant 3.906250e-03 : f32
    %56 = vector.broadcast %cst_34 : f32 to vector<16x1xf32>
    %57 = arith.mulf %53, %56 : vector<16x1xf32>
    %58 = arith.mulf %55, %55 : vector<16x1xf32>
    %59 = arith.subf %57, %58 : vector<16x1xf32>
    %cst_35 = arith.constant 0.000000e+00 : f32
    %60 = vector.broadcast %cst_35 : f32 to vector<16x1xf32>
    %61 = arith.maximumf %59, %60 : vector<16x1xf32>
    %cst_36 = arith.constant 9.99999974E-6 : f32
    %62 = vector.broadcast %cst_36 : f32 to vector<16x1xf32>
    %63 = arith.addf %61, %62 : vector<16x1xf32>
    %64 = math.rsqrt %63 : vector<16x1xf32>
    %c0_37 = arith.constant 0 : index
    %c0_38 = arith.constant 0 : index
    %65 = vector.load %arg11[%c0_37, %c0_38] : memref<16x1xf32, #tpu.memory_space<vmem>>, vector<16x1xf32>
    %66 = arith.mulf %65, %64 : vector<16x1xf32>
    %c0_39 = arith.constant 0 : index
    %c0_40 = arith.constant 0 : index
    %67 = vector.load %arg12[%c0_39, %c0_40] : memref<16x1xf32, #tpu.memory_space<vmem>>, vector<16x1xf32>
    %68 = arith.mulf %55, %66 : vector<16x1xf32>
    %69 = arith.subf %67, %68 : vector<16x1xf32>
    %70 = vector.extract_strided_slice %42 {offsets = [0, 0], sizes = [16, 128], strides = [1, 1]} : vector<32x128xf32> to vector<16x128xf32>
    %71 = vector.broadcast %66 : vector<16x1xf32> to vector<16x128xf32>
    %72 = arith.mulf %70, %71 : vector<16x128xf32>
    %73 = vector.broadcast %69 : vector<16x1xf32> to vector<16x128xf32>
    %74 = arith.addf %72, %73 : vector<16x128xf32>
    %c0_41 = arith.constant 0 : index
    %c0_42 = arith.constant 0 : index
    %75 = vector.load %arg13[%c0_41, %c0_42] : memref<32x128xf32, #tpu.memory_space<vmem>>, vector<16x128xf32>
    tpu.vector_store %arg13[%c0_41, %c0_42], %74 {strides = array<i32>} : memref<32x128xf32, #tpu.memory_space<vmem>>, vector<16x128xf32>,
    %76 = vector.extract_strided_slice %42 {offsets = [16, 0], sizes = [16, 128], strides = [1, 1]} : vector<32x128xf32> to vector<16x128xf32>
    %77 = vector.broadcast %66 : vector<16x1xf32> to vector<16x128xf32>
    %78 = arith.mulf %76, %77 : vector<16x128xf32>
    %79 = vector.broadcast %69 : vector<16x1xf32> to vector<16x128xf32>
    %80 = arith.addf %78, %79 : vector<16x128xf32>
    %c16 = arith.constant 16 : index
    %c0_43 = arith.constant 0 : index
    %81 = vector.load %arg13[%c16, %c0_43] : memref<32x128xf32, #tpu.memory_space<vmem>>, vector<16x128xf32>
    tpu.vector_store %arg13[%c16, %c0_43], %80 {strides = array<i32>} : memref<32x128xf32, #tpu.memory_space<vmem>>, vector<16x128xf32>,
    return
  }
}

</mosaic_0001>

<bundles_post_ra>
// kernel: tile.23
= control target key start
LH: loop header
LB: loop body
LE: loop exit
PB: predicated region body
PF: predicated region fallthrough
CT: control target
= control target key end

     0   :  { %s28_s0 = inlined_call_operand.vmem [shape: f32[16], index: 0, kind: input, shape index: {}]   ;;  %s29_s1 = inlined_call_operand.vmem [shape: f32[10,16], index: 1, kind: output, shape index: {}]  }
   0x1   :  { %v4_v0 = vld [vmem:[%s28_s0] ss:$0 sm:$0xff] }
   0x2   :  { %5 = vst [vmem:[%s29_s1] sm:$0xff] %v4_v0 }
   0x3   :  { %8 = vst [vmem:[%s29_s1 + $0x8] sm:$0xff] %v4_v0 }

// kernel: tile.24
= control target key start
LH: loop header
LB: loop body
LE: loop exit
PB: predicated region body
PF: predicated region fallthrough
CT: control target
= control target key end

     0   :  { %s76_s10 = smov 112   ;;  %s77_s11 = smov 80   ;;  %vm4_vm0 = vcmask 130048   ;;  %vm10_vm1 = vcmask 1048448   ;;  %vm16_vm2 = vcmask 917248   ;;  %vm22_vm3 = vcmask 786048   ;;  %s123_s0 = inlined_call_operand.vmem [shape: f32[10,16], index: 0, kind: input, shape index: {}]   ;;  %s124_s1 = inlined_call_operand.vmem [shape: f32[1,160], index: 1, kind: output, shape index: {}]  }
   0x1   :  { %v61_v0 = vld [vmem:[%s123_s0 + $0x7] sm:$0x1]   ;;  %v63_v1 = vld [vmem:[%s123_s0 + $0x5] sm:$0x1]   ;;  %v65_v2 = vld [vmem:[%s123_s0 + $0x3] sm:$0x1]  }
   0x2   :  { %8 = vrot.lane.b32.xlu0 %v61_v0, %s76_s10  ;;  %20 = vrot.lane.b32.xlu1 %v63_v1, %s77_s11  ;;  %s78_s14 = smov 48   ;;  %v62_v3 = vld [vmem:[%s123_s0 + $0x6] sm:$0x1]   ;;  %v64_v4 = vld [vmem:[%s123_s0 + $0x4] sm:$0x1]   ;;  %s79_s19 = smov 96  }
   0x3   :  { %32 = vrot.lane.b32.xlu2 %v65_v2, %s78_s14  ;;  %s80_s20 = smov 64   ;;  %v66_v5 = vld [vmem:[%s123_s0 + $0x2] sm:$0x1]   ;;  %s43_s23 = smov 3  ;;  %vm28_vm4 = vcmask 654848   ;;  %vm34_vm5 = vcmask 523648  }
   0x4   :  { %s81_s24 = smov 32   ;;  %v67_v6 = vld [vmem:[%s123_s0 + $0x1] ss:$8 sm:%s43_s23]   ;;  %s82_s27 = smov 16   ;;  %vm40_vm6 = vcmask 392448   ;;  %vm47_vm7 = vcmask 261248  }
   0x5   :  { %s2_s28 = smov 3 }
   0x6   :  { %v3_v7 = vld [vmem:[%s123_s0] ss:$8 sm:%s2_s28]  }
   0x7   :  { %5 = vst.msk [vmem:[#allocation0] ss:$8 sm:$0x3] %vm4_vm0, %v3_v7  }
   0xa   :  { %14 = vrot.lane.b32.xlu0 %v62_v3, %s79_s19  ;;  %26 = vrot.lane.b32.xlu1 %v64_v4, %s80_s20 }
   0xb   :  { %38 = vrot.lane.b32.xlu2 %v66_v5, %s81_s24 }
  0x12   :  { %45 = vrot.lane.b32.xlu0 %v67_v6, %s82_s27 }
  0x5d   :  { %v33_v8 = vpop.permute.xlu2 %32  }
  0x65   :  { %v39_v9 = vpop.permute.xlu2 %38  }
  0x74   :  { %v9_v10 = vpop.permute.xlu0 %8   ;;  %v21_v11 = vpop.permute.xlu1 %20  }
  0x75   :  { %11 = vst.msk [vmem:[#allocation0] sm:$0x1] %vm10_vm1, %v9_v10  }
  0x7c   :  { %v15_v12 = vpop.permute.xlu0 %14   ;;  %v27_v13 = vpop.permute.xlu1 %26  }
  0x7d   :  { %17 = vst.msk [vmem:[#allocation0] sm:$0x1] %vm16_vm2, %v15_v12  }
  0x7e   :  { %23 = vst.msk [vmem:[#allocation0] sm:$0x1] %vm22_vm3, %v21_v11  }
  0x7f   :  { %29 = vst.msk [vmem:[#allocation0] sm:$0x1] %vm28_vm4, %v27_v13  }
  0x80   :  { %35 = vst.msk [vmem:[#allocation0] sm:$0x1] %vm34_vm5, %v33_v8  }
  0x81   :  { %41 = vst.msk [vmem:[#allocation0] sm:$0x1] %vm40_vm6, %v39_v9  }
  0x84   :  { %v46_v14 = vpop.permute.xlu0 %45  }
  0x85   :  { %48 = vst.msk [vmem:[#allocation0] ss:$8 sm:$0x3] %vm47_vm7, %v46_v14  }
  0x8c   :  { %v51_v15 = vld [vmem:[#allocation0] sm:$0x1]  ;;  %v56_v16 = vld [vmem:[#allocation0 + $0x8] sm:$0x1] }
  0x8d   :  { %54 = vst [vmem:[%s124_s1] sm:$0x1] %v51_v15 }
  0x8e   :  { %68 = vst [vmem:[%s124_s1 + $0x1] sm:$0x1] %v56_v16 }

// kernel: tile.33
= control target key start
LH: loop header
LB: loop body
LE: loop exit
PB: predicated region body
PF: predicated region fallthrough
CT: control target
= control target key end

     0   :  { %s22_s0 = inlined_call_operand.vmem [shape: f32[16], index: 0, kind: input, shape index: {}]   ;;  %s23_s1 = inlined_call_operand.vmem [shape: f32[8,16], index: 1, kind: output, shape index: {}]  }
   0x1   :  { %v4_v0 = vld [vmem:[%s22_s0] ss:$0 sm:$0xff] }
   0x2   :  { %5 = vst [vmem:[%s23_s1] sm:$0xff] %v4_v0 }

// kernel: tile.34
= control target key start
LH: loop header
LB: loop body
LE: loop exit
PB: predicated region body
PF: predicated region fallthrough
CT: control target
= control target key end

     0   :  { %s67_s10 = smov 112   ;;  %s68_s11 = smov 80   ;;  %vm3_vm0 = vcmask 130048   ;;  %vm9_vm1 = vcmask 1048448   ;;  %vm15_vm2 = vcmask 917248   ;;  %vm21_vm3 = vcmask 786048   ;;  %s111_s0 = inlined_call_operand.vmem [shape: f32[8,16], index: 0, kind: input, shape index: {}]   ;;  %s112_s1 = inlined_call_operand.vmem [shape: f32[1,128], index: 1, kind: output, shape index: {}]  }
   0x1   :  { %v53_v0 = vld [vmem:[%s111_s0 + $0x7] sm:$0x1]   ;;  %v55_v1 = vld [vmem:[%s111_s0 + $0x5] sm:$0x1]   ;;  %v57_v2 = vld [vmem:[%s111_s0 + $0x3] sm:$0x1]  }
   0x2   :  { %7 = vrot.lane.b32.xlu0 %v53_v0, %s67_s10  ;;  %19 = vrot.lane.b32.xlu1 %v55_v1, %s68_s11  ;;  %s69_s14 = smov 48   ;;  %v54_v3 = vld [vmem:[%s111_s0 + $0x6] sm:$0x1]   ;;  %v56_v4 = vld [vmem:[%s111_s0 + $0x4] sm:$0x1]   ;;  %s70_s21 = smov 96  }
   0x3   :  { %31 = vrot.lane.b32.xlu2 %v57_v2, %s69_s14  ;;  %v58_v5 = vld [vmem:[%s111_s0 + $0x2] sm:$0x1]   ;;  %s71_s22 = smov 64   ;;  %s72_s23 = smov 32   ;;  %v59_v6 = vld [vmem:[%s111_s0 + $0x1] sm:$0x1]  }
   0x4   :  { %s73_s26 = smov 16   ;;  %v2_v7 = vld [vmem:[%s111_s0] sm:$0x1]   ;;  %vm27_vm4 = vcmask 654848   ;;  %vm33_vm5 = vcmask 523648   ;;  %vm39_vm6 = vcmask 392448  }
   0x5   :  { %4 = vst.msk [vmem:[#allocation0] sm:$0x1] %vm3_vm0, %v2_v7   ;;  %vm45_vm7 = vcmask 261248  }
   0xa   :  { %13 = vrot.lane.b32.xlu0 %v54_v3, %s70_s21  ;;  %25 = vrot.lane.b32.xlu1 %v56_v4, %s71_s22 }
   0xb   :  { %37 = vrot.lane.b32.xlu2 %v58_v5, %s72_s23 }
  0x12   :  { %43 = vrot.lane.b32.xlu0 %v59_v6, %s73_s26 }
  0x5d   :  { %v32_v8 = vpop.permute.xlu2 %31  }
  0x65   :  { %v38_v9 = vpop.permute.xlu2 %37  }
  0x74   :  { %v8_v10 = vpop.permute.xlu0 %7   ;;  %v20_v11 = vpop.permute.xlu1 %19  }
  0x75   :  { %10 = vst.msk [vmem:[#allocation0] sm:$0x1] %vm9_vm1, %v8_v10  }
  0x7c   :  { %v14_v12 = vpop.permute.xlu0 %13   ;;  %v26_v13 = vpop.permute.xlu1 %25  }
  0x7d   :  { %16 = vst.msk [vmem:[#allocation0] sm:$0x1] %vm15_vm2, %v14_v12  }
  0x7e   :  { %22 = vst.msk [vmem:[#allocation0] sm:$0x1] %vm21_vm3, %v20_v11  }
  0x7f   :  { %28 = vst.msk [vmem:[#allocation0] sm:$0x1] %vm27_vm4, %v26_v13  }
  0x80   :  { %34 = vst.msk [vmem:[#allocation0] sm:$0x1] %vm33_vm5, %v32_v8  }
  0x81   :  { %40 = vst.msk [vmem:[#allocation0] sm:$0x1] %vm39_vm6, %v38_v9  }
  0x84   :  { %v44_v14 = vpop.permute.xlu0 %43  }
  0x85   :  { %46 = vst.msk [vmem:[#allocation0] sm:$0x1] %vm45_vm7, %v44_v14  }
  0x8c   :  { %v49_v15 = vld [vmem:[#allocation0] sm:$0x1] }
  0x8d   :  { %52 = vst [vmem:[%s112_s1] sm:$0x1] %v49_v15 }

// kernel: stgcn_block_forward.1
= control target key start
LH: loop header
LB: loop body
LE: loop exit
PB: predicated region body
PF: predicated region fallthrough
CT: control target
= control target key end

     0   :  { %vm66_vm0 = vcmask 392192   ;;  %s1594_s2 = inlined_call_operand.vmem [shape: f32[48,160], index: 2, kind: input, shape index: {}]   ;;  %s1595_s0 = inlined_call_operand.vmem [shape: f32[32,48], index: 0, kind: input, shape index: {}]   ;;  %s1596_s3 = inlined_call_operand.vmem [shape: f32[48,160], index: 3, kind: input, shape index: {}]   ;;  %s1597_s5 = inlined_call_operand.vmem [shape: f32[1,160], index: 5, kind: input, shape index: {}]   ;;  %s1598_s4 = inlined_call_operand.vmem [shape: f32[1,160], index: 4, kind: input, shape index: {}]   ;;  %s1599_s6 = inlined_call_operand.vmem [shape: f32[160,80], index: 6, kind: input, shape index: {}]   ;;  %s1600_s1 = inlined_call_operand.vmem [shape: f32[32,32], index: 1, kind: input, shape index: {}]   ;;  %s1601_s8 = inlined_call_operand.vmem [shape: f32[80,128], index: 8, kind: input, shape index: {}]   ;;  %s1602_s7 = inlined_call_operand.vmem [shape: f32[80,128], index: 7, kind: input, shape index: {}]   ;;  %s1603_s10 = inlined_call_operand.vmem [shape: f32[1,128], index: 10, kind: input, shape index: {}]   ;;  %s1604_s9 = inlined_call_operand.vmem [shape: f32[1,128], index: 9, kind: input, shape index: {}]   ;;  %s1605_s11 = inlined_call_operand.vmem [shape: f32[16,1], index: 11, kind: input, shape index: {}]   ;;  %s1606_s12 = inlined_call_operand.vmem [shape: f32[16,1], index: 12, kind: input, shape index: {}]   ;;  %s1607_s13 = inlined_call_operand.vmem [shape: f32[32,128], index: 13, kind: output, shape index: {}]  }
   0x1   :  { %v58_v0 = vld [vmem:[%s1594_s2 + $0x50] sm:$0xff]  ;;  %v59_v1 = vld [vmem:[%s1594_s2 + $0x58] sm:$0xff]  ;;  %v56_v2 = vld [vmem:[%s1594_s2 + $0x40] sm:$0xff] }
   0x2   :  { %883 = vmatpush.msra.mxu2 %v58_v0  ;;  %889 = vmatpush.msra.mxu3 %v59_v1  ;;  %v57_v3 = vld [vmem:[%s1594_s2 + $0x48] sm:$0xff]  ;;  %v54_v4 = vld [vmem:[%s1594_s2 + $0x30] sm:$0xff]  ;;  %v55_v5 = vld [vmem:[%s1594_s2 + $0x38] sm:$0xff] }
   0x3   :  { %89 = vmatpush.msra.mxu0 %v58_v0  ;;  %118 = vmatpush.msra.mxu1 %v59_v1  ;;  %v52_v6 = vld [vmem:[%s1594_s2 + $0x20] sm:$0xff]  ;;  %v53_v7 = vld [vmem:[%s1594_s2 + $0x28] sm:$0xff]  ;;  %v50_v8 = vld [vmem:[%s1594_s2 + $0x10] sm:$0xff] }
   0x4   :  { %884 = vmatpush.msra.mxu2 %v56_v2  ;;  %890 = vmatpush.msra.mxu3 %v57_v3  ;;  %v51_v9 = vld [vmem:[%s1594_s2 + $0x18] sm:$0xff]  ;;  %v48_v10 = vld [vmem:[%s1594_s2] sm:$0xff]  ;;  %v49_v11 = vld [vmem:[%s1594_s2 + $0x8] sm:$0xff] }
   0x5   :  { %90 = vmatpush.msra.mxu0 %v56_v2  ;;  %119 = vmatpush.msra.mxu1 %v57_v3  ;;  %v46_v12 = vld [vmem:[%s1595_s0 + $0x10] sm:$0xff]  ;;  %v148_v14 = vld [vmem:[%s1596_s3 + $0x58] sm:$0xff]  ;;  %v145_v15 = vld [vmem:[%s1596_s3 + $0x40] sm:$0xff] }
   0x6   :  { %885 = vmatpush.msra.mxu2 %v54_v4  ;;  %891 = vmatpush.msra.mxu3 %v55_v5  ;;  %v147_v13 = vld [vmem:[%s1596_s3 + $0x50] sm:$0xff]  ;;  %v146_v16 = vld [vmem:[%s1596_s3 + $0x48] sm:$0xff]  ;;  %v144_v18 = vld [vmem:[%s1596_s3 + $0x38] sm:$0xff] }
   0x7   :  { %91 = vmatpush.msra.mxu0 %v54_v4  ;;  %120 = vmatpush.msra.mxu1 %v55_v5  ;;  %v143_v17 = vld [vmem:[%s1596_s3 + $0x30] sm:$0xff]  ;;  %v44_v19 = vld [vmem:[%s1595_s0] sm:$0xff]  ;;  %v142_v21 = vld [vmem:[%s1596_s3 + $0x28] sm:$0xff] }
   0x8   :  { %886 = vmatpush.msra.mxu2 %v52_v6  ;;  %892 = vmatpush.msra.mxu3 %v53_v7  ;;  %v141_v20 = vld [vmem:[%s1596_s3 + $0x20] sm:$0xff]  ;;  %v47_v22 = vld [vmem:[%s1595_s0 + $0x18] sm:$0xff]  ;;  %v139_v23 = vld [vmem:[%s1596_s3 + $0x10] sm:$0xff] }
   0x9   :  { %92 = vmatpush.msra.mxu0 %v52_v6  ;;  %121 = vmatpush.msra.mxu1 %v53_v7  ;;  %v140_v24 = vld [vmem:[%s1596_s3 + $0x18] sm:$0xff]  ;;  %v137_v25 = vld [vmem:[%s1596_s3] sm:$0xff]  ;;  %v138_v26 = vld [vmem:[%s1596_s3 + $0x8] sm:$0xff] }
   0xa   :  { %887 = vmatpush.msra.mxu2 %v50_v8  ;;  %893 = vmatpush.msra.mxu3 %v51_v9  ;;  %v45_v27 = vld [vmem:[%s1595_s0 + $0x8] sm:$0xff]  ;;  %v149_v32 = vld [vmem:[%s1597_s5] sm:$0x3] }
   0xb   :  { %93 = vmatpush.msra.mxu0 %v50_v8  ;;  %122 = vmatpush.msra.mxu1 %v51_v9  ;;  %v151_v33 = vperm.slane %v149_v32, 0  ;;  %v152_v34 = vperm.slane %v149_v32, 1  ;;  %v60_v62 = vld [vmem:[%s1598_s4] sm:$0x3] }
   0xc   :  { %888 = vmatpush.msra.mxu2 %v48_v10  ;;  %894 = vmatpush.msra.mxu3 %v49_v11  ;;  %v62_v5 = vperm.slane %v60_v62, 0 }
   0xd   :  { %837 = vmatmul.msk.f32.vlgmr.msra.gmra.mxu2 %vm66_vm0, %v46_v12  ;;  %841 = vmatmul.msk.f32.vlgmr.msra.gmra.mxu3 %vm66_vm0, %v46_v12 }
   0xe   :  { %165 = vmatpush.msrb.mxu2 %v147_v13  ;;  %194 = vmatpush.msrb.mxu3 %v148_v14 }
   0xf   :  { %94 = vmatpush.msra.mxu0 %v48_v10  ;;  %123 = vmatpush.msra.mxu1 %v49_v11  ;;  %v63_v10 = vperm.slane %v60_v62, 1 }
  0x10   :  { %166 = vmatpush.msrb.mxu2 %v145_v15  ;;  %195 = vmatpush.msrb.mxu3 %v146_v16 }
  0x11   :  { %835 = vmatmul.msk.f32.vlgmr.msra.gmra.mxu0 %vm66_vm0, %v44_v19  ;;  %839 = vmatmul.msk.f32.vlgmr.msra.gmra.mxu1 %vm66_vm0, %v44_v19 }
  0x12   :  { %167 = vmatpush.msrb.mxu2 %v143_v17  ;;  %196 = vmatpush.msrb.mxu3 %v144_v18 }
  0x14   :  { %168 = vmatpush.msrb.mxu2 %v141_v20  ;;  %197 = vmatpush.msrb.mxu3 %v142_v21 }
  0x15   :  { %838 = vmatmul.msk.f32.gmra.mxu2 %vm66_vm0, %v47_v22  ;;  %842 = vmatmul.msk.f32.gmra.mxu3 %vm66_vm0, %v47_v22 }
  0x16   :  { %169 = vmatpush.msrb.mxu2 %v139_v23  ;;  %198 = vmatpush.msrb.mxu3 %v140_v24 }
  0x18   :  { %170 = vmatpush.msrb.mxu2 %v137_v25  ;;  %199 = vmatpush.msrb.mxu3 %v138_v26 }
  0x19   :  { %836 = vmatmul.msk.f32.gmra.mxu0 %vm66_vm0, %v45_v27  ;;  %840 = vmatmul.msk.f32.gmra.mxu1 %vm66_vm0, %v45_v27 }
  0x1d   :  { %843 = vmatmul.msk.f32.vlgmr.msrb.gmra.mxu2 %vm66_vm0, %v44_v19  ;;  %847 = vmatmul.msk.f32.vlgmr.msrb.gmra.mxu3 %vm66_vm0, %v44_v19 }
  0x25   :  { %844 = vmatmul.msk.f32.gmra.mxu2 %vm66_vm0, %v45_v27  ;;  %848 = vmatmul.msk.f32.gmra.mxu3 %vm66_vm0, %v45_v27 }
  0x2d   :  { %845 = vmatmul.msk.f32.gmra.mxu2 %vm66_vm0, %v46_v12  ;;  %849 = vmatmul.msk.f32.gmra.mxu3 %vm66_vm0, %v46_v12 }
  0x35   :  { %846 = vmatmul.msk.f32.gmra.mxu2 %vm66_vm0, %v47_v22  ;;  %850 = vmatmul.msk.f32.gmra.mxu3 %vm66_vm0, %v47_v22 }
  0x8e   :  { %v96_v58 = vpop.f32.mrf.mxu0  ;;  %v125_v60 = vpop.f32.mrf.mxu1 }
  0x8f   :  { %v1179_v25 = vadd.f32 %v96_v58, %v62_v5  ;;  %v1181_v26 = vadd.f32 %v125_v60, %v63_v10 }
  0x90   :  { %v1124_v28 = vpop.f32.mrf.mxu2  ;;  %v1126_v29 = vpop.f32.mrf.mxu3 }
  0x91   :  { %v1164_v17 = vadd.f32 %v1124_v28, %v62_v5  ;;  %v1167_v20 = vadd.f32 %v1126_v29, %v63_v10 }
  0x96   :  { %v99_v15 = vpop.f32.mrf.mxu0  ;;  %v128_v18 = vpop.f32.mrf.mxu1 }
  0x97   :  { %v1183_v27 = vadd.f32 %v99_v15, %v62_v5  ;;  %v1185_v28 = vadd.f32 %v128_v18, %v63_v10  ;;  %v381_v18 = vld [vmem:[%s1600_s1] sm:$0xff] }
  0x98   :  { %v1128_v30 = vpop.f32.mrf.mxu2  ;;  %v1130_v31 = vpop.f32.mrf.mxu3 }
  0x99   :  { %v1170_v21 = vadd.f32 %v1128_v30, %v62_v5  ;;  %v1177_v24 = vadd.f32 %v1130_v31, %v63_v10 }
  0xa0   :  { %v172_v35 = vpop.f32.mrf.mxu2  ;;  %v201_v36 = vpop.f32.mrf.mxu3 }
  0xa1   :  { %v173_v37 = vadd.f32 %v172_v35, %v151_v33  ;;  %v202_v39 = vadd.f32 %v201_v36, %v152_v34 }
  0xa3   :  { %v851_v38 = vmul.f32 -1.442695, %v173_v37  ;;  %v852_v40 = vmul.f32 -1.442695, %v202_v39 }
  0xa5   :  { %901 = vpow2.f32 %v851_v38 }
  0xa6   :  { %903 = vpow2.f32 %v852_v40 }
  0xa8   :  { %v175_v41 = vpop.f32.mrf.mxu2  ;;  %v204_v42 = vpop.f32.mrf.mxu3 }
  0xa9   :  { %v176_v43 = vadd.f32 %v175_v41, %v151_v33  ;;  %v205_v44 = vadd.f32 %v204_v42, %v152_v34 }
  0xab   :  { %v902_v45 = vpop.eup %901  ;;  %v853_v46 = vmul.f32 -1.442695, %v176_v43  ;;  %v854_v47 = vmul.f32 -1.442695, %v205_v44 }
  0xac   :  { %v1135_v48 = vadd.f32 1.0, %v902_v45  ;;  %v904_v51 = vpop.eup %903 }
  0xad   :  { %905 = vpow2.f32 %v853_v46  ;;  %v1138_v57 = vadd.f32 1.0, %v904_v51 }
  0xae   :  { %907 = vpow2.f32 %v854_v47  ;;  %v256_v22 = vand.u32 2147483648, %v1135_v48  ;;  %vm250_vm1 = vweird.f32 %v1135_v48 }
  0xaf   :  { %909 = vrcp.f32 %v1135_v48  ;;  %v269_v35 = vand.u32 2147483647, %v1138_v57  ;;  %v271_v40 = vand.u32 2147483648, %v1138_v57  ;;  %vm265_vm3 = vweird.f32 %v1138_v57 }
  0xb0   :  { %v178_v49 = vpop.f32.mrf.mxu2  ;;  %v207_v50 = vpop.f32.mrf.mxu3  ;;  %v1202_v39 = vor.u32 1.1754944e-38, %v256_v22 }
  0xb1   :  { %v179_v52 = vadd.f32 %v178_v49, %v151_v33  ;;  %v208_v53 = vadd.f32 %v207_v50, %v152_v34 }
  0xb3   :  { %v906_v54 = vpop.eup %905  ;;  %v855_v55 = vmul.f32 -1.442695, %v179_v52  ;;  %v856_v56 = vmul.f32 -1.442695, %v208_v53 }
  0xb4   :  { %v1140_v59 = vadd.f32 1.0, %v906_v54  ;;  %v908_v61 = vpop.eup %907 }
  0xb5   :  { %911 = vpow2.f32 %v855_v55  ;;  %v1145_v63 = vadd.f32 1.0, %v908_v61  ;;  %v1147_v0 = vpop.eup %909 }
  0xb6   :  { %913 = vpow2.f32 %v856_v56  ;;  %v246_v9 = vmul.f32 %v1147_v0, %v1135_v48  ;;  %v286_v31 = vand.u32 2147483648, %v1140_v59  ;;  %v284_v43 = vand.u32 2147483647, %v1140_v59 }
  0xb7   :  { %915 = vrcp.f32 %v1138_v57  ;;  %v301_v44 = vand.u32 2147483648, %v1145_v63  ;;  %vm251_vm2 = vweird.f32 %v1147_v0  ;;  %vm280_vm4 = vweird.f32 %v1140_v59 }
  0xb8   :  { %v181_v1 = vpop.f32.mrf.mxu2  ;;  %v210_v2 = vpop.f32.mrf.mxu3  ;;  %917 = vrcp.f32 %v1140_v59  ;;  %v247_v19 = vsub.f32 1.0, %v246_v9  ;;  %v1218_v52 = vor.u32 1.1754944e-38, %v286_v31  ;;  %v299_v61 = vand.u32 2147483647, %v1145_v63  ;;  %vm1239_vm7 = vmor %vm250_vm1, %vm251_vm2 }
  0xb9   :  { %v182_v3 = vadd.f32 %v181_v1, %v151_v33  ;;  %v211_v4 = vadd.f32 %v210_v2, %v152_v34  ;;  %919 = vrcp.f32 %v1145_v63  ;;  %v254_v34 = vand.u32 2147483647, %v1135_v48 }
  0xba   :  { %v248_v33 = vmul.f32 %v1147_v0, %v247_v19  ;;  %v1233_v2 = vor.u32 1.1754944e-38, %v301_v44  ;;  %vm1261_vm13 = vcmp.eq.f32.partialorder %v284_v43, 8.507059e+37  ;;  %vm1275_vm1 = vcmp.eq.f32.partialorder %v299_v61, 8.507059e+37 }
  0xbb   :  { %v912_v6 = vpop.eup %911  ;;  %v857_v7 = vmul.f32 -1.442695, %v182_v3  ;;  %v858_v8 = vmul.f32 -1.442695, %v211_v4  ;;  %vm1279_vm2 = vcmp.eq.f32.partialorder %v254_v34, 8.507059e+37  ;;  %v461_v34 = vld [vmem:[%s1599_s6 + $0x28] sm:$0xff] }
  0xbc   :  { %v1154_v11 = vadd.f32 1.0, %v912_v6  ;;  %v914_v12 = vpop.eup %913  ;;  %v1221_v53 = vadd.f32 %v1147_v0, %v248_v33 }
  0xbd   :  { %921 = vpow2.f32 %v857_v7  ;;  %v1156_v13 = vpop.eup %915  ;;  %v1159_v14 = vadd.f32 1.0, %v914_v12 }
  0xbe   :  { %923 = vrcp.f32 %v1154_v11  ;;  %v1161_v16 = vpop.eup %917  ;;  %v261_v30 = vmul.f32 %v1156_v13, %v1138_v57  ;;  %v314_v54 = vand.u32 2147483647, %v1154_v11  ;;  %vm266_vm5 = vweird.f32 %v1156_v13  ;;  %v471_v57 = vld [vmem:[%s1599_s6 + $0x78] sm:$0xff] }
  0xbf   :  { %925 = vpow2.f32 %v858_v8  ;;  %v1174_v23 = vpop.eup %919  ;;  %v276_v29 = vmul.f32 %v1161_v16, %v1140_v59  ;;  %v316_v58 = vand.u32 2147483648, %v1154_v11  ;;  %v329_v62 = vand.u32 2147483647, %v1159_v14  ;;  %vm1287_vm6 = vmor %vm265_vm3, %vm266_vm5  ;;  %488 = vmatpush.msra.mxu2 %v471_v57  ;;  %v559_v59 = vld [vmem:[%s1602_s7 + $0x48] sm:$0xff] }
  0xc0   :  { %927 = vrcp.f32 %v1159_v14  ;;  %v291_v38 = vmul.f32 %v1174_v23, %v1145_v63  ;;  %v262_v49 = vsub.f32 1.0, %v261_v30  ;;  %vm310_vm8 = vweird.f32 %v1154_v11 }
  0xc1   :  { %v277_v47 = vsub.f32 1.0, %v276_v29  ;;  %vm281_vm9 = vweird.f32 %v1161_v16  ;;  %v253_v6 = vsel %vm1239_vm7, %v1147_v0, %v1221_v53  ;;  %vm1251_vm10 = vcmp.eq.f32.partialorder %v314_v54, 8.507059e+37 }
  0xc2   :  { %v292_v55 = vsub.f32 1.0, %v291_v38  ;;  %v263_v4 = vmul.f32 %v1156_v13, %v262_v49  ;;  %vm325_vm11 = vweird.f32 %v1159_v14  ;;  %v331_v8 = vand.u32 2147483648, %v1159_v14  ;;  %vm1309_vm5 = vmor %vm280_vm4, %vm281_vm9  ;;  %v465_v38 = vld [vmem:[%s1599_s6 + $0x48] sm:$0xff] }
  0xc3   :  { %v922_v32 = vpop.eup %921  ;;  %v278_v1 = vmul.f32 %v1161_v16, %v277_v47  ;;  %v317_v15 = vor.u32 1.1754944e-38, %v316_v58  ;;  %vm1265_vm14 = vcmp.eq.f32.partialorder %v329_v62, 8.507059e+37  ;;  %vm1631_vm3 = vweird.f32 %v1145_v63 }
  0xc4   :  { %v1196_v36 = vpop.eup %923  ;;  %v1198_v37 = vadd.f32 1.0, %v922_v32  ;;  %v293_v9 = vmul.f32 %v1174_v23, %v292_v55  ;;  %v264_v30 = vadd.f32 %v1156_v13, %v263_v4  ;;  %v332_v47 = vor.u32 1.1754944e-38, %v331_v8 }
  0xc5   :  { %v926_v41 = vpop.eup %925  ;;  %v306_v42 = vmul.f32 %v1196_v36, %v1154_v11  ;;  %vm311_vm12 = vweird.f32 %v1196_v36  ;;  %v279_v29 = vadd.f32 %v1161_v16, %v278_v1  ;;  %v1626_v55 = vmov 0  ;;  %v456_v11 = vld [vmem:[%s1599_s6] sm:$0xff] }
  0xc6   :  { %v1210_v45 = vpop.eup %927  ;;  %929 = vrcp.f32 %v1198_v37  ;;  %v1213_v46 = vadd.f32 1.0, %v926_v41  ;;  %v1618_v41 = vmov 0  ;;  %v344_v43 = vand.u32 2147483647, %v1198_v37  ;;  %vm1297_vm15 = vmor %vm310_vm8, %vm311_vm12 }
  0xc7   :  { %v307_v50 = vsub.f32 1.0, %v306_v42  ;;  %v321_v51 = vmul.f32 %v1210_v45, %v1159_v14  ;;  %vm326_vm0 = vweird.f32 %v1210_v45  ;;  %v1619_v41 = vsel %vm1279_vm2, 4294967295, %v1618_v41  ;;  %v463_v42 = vld [vmem:[%s1599_s6 + $0x38] sm:$0xff] }
  0xc8   :  { %931 = vrcp.f32 %v1213_v46  ;;  %v346_v44 = vand.u32 2147483648, %v1198_v37  ;;  %v294_v49 = vadd.f32 %v1174_v23, %v293_v9  ;;  %vm1315_vm8 = vcmp.eq.f32.partialorder %v269_v35, 8.507059e+37  ;;  %vm1326_vm4 = vmor %vm325_vm11, %vm326_vm0 }
  0xc9   :  { %v308_v56 = vmul.f32 %v1196_v36, %v307_v50  ;;  %v322_v60 = vsub.f32 1.0, %v321_v51  ;;  %v1627_v55 = vsel %vm1315_vm8, 4294967295, %v1626_v55  ;;  %vm340_vm12 = vweird.f32 %v1198_v37 }
  0xca   :  { %v283_v35 = vsel %vm1309_vm5, %v1161_v16, %v279_v29  ;;  %vm345_vm2 = vcmp.eq.f32.partialorder %v344_v43, 8.507059e+37  ;;  %v347_v61 = vor.u32 1.1754944e-38, %v346_v44  ;;  %v268_v62 = vsel %vm1287_vm6, %v1156_v13, %v264_v30  ;;  %v468_v29 = vld [vmem:[%s1599_s6 + $0x60] sm:$0xff]  ;;  %v473_v30 = vld [vmem:[%s1599_s6 + $0x88] sm:$0xff]  ;;  %v462_v43 = vld [vmem:[%s1599_s6 + $0x30] sm:$0xff] }
  0xcb   :  { %v323_v5 = vmul.f32 %v1210_v45, %v322_v60  ;;  %v309_v12 = vadd.f32 %v1196_v36, %v308_v56  ;;  %v359_v56 = vand.u32 2147483647, %v1213_v46  ;;  %vm355_vm5 = vweird.f32 %v1213_v46  ;;  %v383_v44 = vld [vmem:[%s1600_s1 + $0x10] sm:$0xff] }
  0xcc   :  { %v930_v7 = vpop.eup %929  ;;  %v288_v48 = vsel %vm1261_vm13, %v1218_v52, %v283_v35  ;;  %vm1636_vm13 = vnez %v1627_v55  ;;  %vm385_vm7 = vcmask 261120   ;;  %v472_v55 = vld [vmem:[%s1599_s6 + $0x80] sm:$0xff]  ;;  %v613_v35 = vld [vmem:[%s1601_s8 + $0x38] sm:$0xff] }
  0xcd   :  { %v336_v10 = vmul.f32 %v930_v7, %v1198_v37  ;;  %v324_v33 = vadd.f32 %v1210_v45, %v323_v5  ;;  %v313_v54 = vsel %vm1297_vm15, %v1196_v36, %v309_v12  ;;  %v361_v36 = vand.u32 2147483648, %v1213_v46 }
  0xce   :  { %v932_v19 = vpop.eup %931  ;;  %vm1630_vm15 = vweird.f32 %v1174_v23  ;;  %vm1634_vm11 = vweird.f32 %v930_v7  ;;  %v318_v16 = vsel %vm1251_vm10, %v317_v15, %v313_v54  ;;  %vm360_vm6 = vcmp.eq.f32.partialorder %v359_v56, 8.507059e+37  ;;  %v457_v54 = vld [vmem:[%s1599_s6 + $0x8] sm:$0xff] }
  0xcf   :  { %v337_v32 = vsub.f32 1.0, %v336_v10  ;;  %v351_v31 = vmul.f32 %v932_v19, %v1213_v46  ;;  %vm356_vm9 = vweird.f32 %v932_v19  ;;  %v328_v37 = vsel %vm1326_vm4, %v1210_v45, %v324_v33  ;;  %vm1340_vm8 = vmor %vm1631_vm3, %vm1630_vm15  ;;  %v382_v33 = vld [vmem:[%s1600_s1 + $0x8] sm:$0xff] }
  0xd0   :  { %vm342_vm0 = vmor %vm340_vm12, %vm1634_vm11  ;;  %v298_v63 = vsel %vm1340_vm8, %v1174_v23, %v294_v49  ;;  %v362_v5 = vor.u32 1.1754944e-38, %v361_v36  ;;  %v333_v8 = vsel %vm1265_vm14, %v332_v47, %v328_v37  ;;  %v369_v46 = vadd.f32 %v318_v16, %v1164_v17  ;;  %v460_v47 = vld [vmem:[%s1599_s6 + $0x20] sm:$0xff]  ;;  %v459_v49 = vld [vmem:[%s1599_s6 + $0x18] sm:$0xff] }
  0xd1   :  { %v338_v50 = vmul.f32 %v930_v7, %v337_v32  ;;  %v352_v51 = vsub.f32 1.0, %v351_v31  ;;  %vm357_vm3 = vmor %vm355_vm5, %vm356_vm9  ;;  %v303_v23 = vsel %vm1275_vm1, %v1233_v2, %v298_v63  ;;  %vm1635_vm10 = vnez %v1619_v41  ;;  %v467_v32 = vld [vmem:[%s1599_s6 + $0x58] sm:$0xff]  ;;  %v466_v31 = vld [vmem:[%s1599_s6 + $0x50] sm:$0xff] }
  0xd2   :  { %v258_v52 = vsel %vm1635_vm10, %v1202_v39, %v253_v6  ;;  %v370_v12 = vadd.f32 %v333_v8, %v1167_v20  ;;  %v367_v15 = vadd.f32 %v288_v48, %v1183_v27  ;;  %v377_v0 = vmax.f32 %v369_v46, 0.0  ;;  %v464_v41 = vld [vmem:[%s1599_s6 + $0x40] sm:$0xff]  ;;  %v615_v56 = vld [vmem:[%s1601_s8 + $0x48] sm:$0xff]  ;;  %v612_v37 = vld [vmem:[%s1601_s8 + $0x30] sm:$0xff] }
  0xd3   :  { %v339_v58 = vadd.f32 %v930_v7, %v338_v50  ;;  %v353_v60 = vmul.f32 %v932_v19, %v352_v51  ;;  %v368_v53 = vadd.f32 %v303_v23, %v1185_v28  ;;  %v365_v39 = vadd.f32 %v258_v52, %v1179_v25  ;;  %v475_v28 = vld [vmem:[%s1599_s6 + $0x98] sm:$0xff]  ;;  %v458_v50 = vld [vmem:[%s1599_s6 + $0x10] sm:$0xff]  ;;  %v614_v36 = vld [vmem:[%s1601_s8 + $0x40] sm:$0xff] }
  0xd4   :  { %v375_v20 = vmax.f32 %v367_v15, 0.0  ;;  %529 = vmatpush.msra.mxu3 %v475_v28  ;;  %v384_v51 = vld [vmem:[%s1600_s1 + $0x18] sm:$0xff]  ;;  %v607_v46 = vld [vmem:[%s1601_s8 + $0x8] sm:$0xff]  ;;  %v606_v23 = vld [vmem:[%s1601_s8] sm:$0xff]  ;;  %vm564_vm14 = vcmask 654336  }
  0xd5   :  { %v343_v45 = vsel %vm342_vm0, %v930_v7, %v339_v58  ;;  %v354_v1 = vadd.f32 %v932_v19, %v353_v60  ;;  %v376_v25 = vmax.f32 %v368_v53, 0.0  ;;  %v373_v6 = vmax.f32 %v365_v39, 0.0  ;;  %v558_v58 = vld [vmem:[%s1602_s7 + $0x40] sm:$0xff]  ;;  %v557_v60 = vld [vmem:[%s1602_s7 + $0x38] sm:$0xff] }
  0xd6   :  { %v348_v4 = vsel %vm345_vm2, %v347_v61, %v343_v45  ;;  %v611_v61 = vld [vmem:[%s1601_s8 + $0x28] sm:$0xff]  ;;  %v609_v45 = vld [vmem:[%s1601_s8 + $0x18] sm:$0xff]  ;;  %v554_v52 = vld [vmem:[%s1602_s7 + $0x20] sm:$0xff] }
  0xd7   :  { %v371_v13 = vadd.f32 %v348_v4, %v1170_v21  ;;  %v358_v7 = vsel %vm357_vm3, %v932_v19, %v354_v1  ;;  %v272_v21 = vor.u32 1.1754944e-38, %v271_v40  ;;  %v470_v40 = vld [vmem:[%s1599_s6 + $0x70] sm:$0xff] }
  0xd8   :  { %v363_v9 = vsel %vm360_vm6, %v362_v5, %v358_v7  ;;  %v474_v19 = vld [vmem:[%s1599_s6 + $0x90] sm:$0xff]  ;;  %489 = vmatpush.msra.mxu2 %v470_v40 }
  0xd9   :  { %v379_v10 = vmax.f32 %v371_v13, 0.0  ;;  %v372_v17 = vadd.f32 %v363_v9, %v1177_v24  ;;  %v273_v2 = vsel %vm1636_vm13, %v272_v21, %v268_v62  ;;  %v378_v24 = vmax.f32 %v370_v12, 0.0  ;;  %530 = vmatpush.msra.mxu3 %v474_v19  ;;  %v610_v62 = vld [vmem:[%s1601_s8 + $0x20] sm:$0xff]  ;;  %v608_v13 = vld [vmem:[%s1601_s8 + $0x10] sm:$0xff]  ;;  %v555_v9 = vld [vmem:[%s1602_s7 + $0x28] sm:$0xff] }
  0xda   :  { %v366_v27 = vadd.f32 %v273_v2, %v1181_v26  ;;  %v469_v26 = vld [vmem:[%s1599_s6 + $0x68] sm:$0xff]  ;;  %v556_v7 = vld [vmem:[%s1602_s7 + $0x30] sm:$0xff]  ;;  %v553_v21 = vld [vmem:[%s1602_s7 + $0x18] sm:$0xff] }
  0xdb   :  { %410 = vmatpush.msrb.mxu0 %v379_v10  ;;  %v380_v3 = vmax.f32 %v372_v17, 0.0  ;;  %490 = vmatpush.msra.mxu2 %v469_v26  ;;  %v552_v10 = vld [vmem:[%s1602_s7 + $0x10] sm:$0xff]  ;;  %v551_v17 = vld [vmem:[%s1602_s7 + $0x8] sm:$0xff]  ;;  %v550_v12 = vld [vmem:[%s1602_s7] sm:$0xff] }
  0xdc   :  { %v374_v22 = vmax.f32 %v366_v27, 0.0  ;;  %531 = vmatpush.msra.mxu3 %v473_v30  ;;  %v899_v19 = vld [vmem:[%s1603_s10] ss:$0 sm:$0xff] }
  0xdd   :  { %439 = vmatpush.msrb.mxu1 %v380_v3  ;;  %411 = vmatpush.msrb.mxu0 %v377_v0 }
  0xde   :  { %491 = vmatpush.msra.mxu2 %v468_v29  ;;  %532 = vmatpush.msra.mxu3 %v472_v55 }
  0xdf   :  { %440 = vmatpush.msrb.mxu1 %v378_v24  ;;  %412 = vmatpush.msrb.mxu0 %v375_v20 }
  0xe0   :  { %492 = vmatpush.msra.mxu2 %v467_v32 }
  0xe1   :  { %441 = vmatpush.msrb.mxu1 %v376_v25  ;;  %413 = vmatpush.msrb.mxu0 %v373_v6 }
  0xe2   :  { %859 = vmatmul.msk.f32.vlgmr.msrb.gmra.mxu0 %vm385_vm7, %v381_v18  ;;  %493 = vmatpush.msra.mxu2 %v466_v31 }
  0xe3   :  { %442 = vmatpush.msrb.mxu1 %v374_v22  ;;  %583 = vmatpush.msra.mxu0 %v559_v59 }
  0xe4   :  { %863 = vmatmul.msk.f32.vlgmr.msrb.gmra.mxu1 %vm385_vm7, %v381_v18  ;;  %494 = vmatpush.msra.mxu2 %v465_v38 }
  0xe5   :  { %626 = vmatpush.msra.mxu1 %v615_v56  ;;  %584 = vmatpush.msra.mxu0 %v558_v58 }
  0xe6   :  { %495 = vmatpush.msra.mxu2 %v464_v41 }
  0xe7   :  { %627 = vmatpush.msra.mxu1 %v614_v36  ;;  %585 = vmatpush.msra.mxu0 %v557_v60 }
  0xe8   :  { %496 = vmatpush.msra.mxu2 %v463_v42 }
  0xe9   :  { %628 = vmatpush.msra.mxu1 %v613_v35  ;;  %586 = vmatpush.msra.mxu0 %v556_v7 }
  0xea   :  { %860 = vmatmul.msk.f32.gmra.mxu0 %vm385_vm7, %v382_v33  ;;  %497 = vmatpush.msra.mxu2 %v462_v43 }
  0xeb   :  { %629 = vmatpush.msra.mxu1 %v612_v37  ;;  %587 = vmatpush.msra.mxu0 %v555_v9 }
  0xec   :  { %864 = vmatmul.msk.f32.gmra.mxu1 %vm385_vm7, %v382_v33  ;;  %498 = vmatpush.msra.mxu2 %v461_v34 }
  0xed   :  { %630 = vmatpush.msra.mxu1 %v611_v61  ;;  %588 = vmatpush.msra.mxu0 %v554_v52 }
  0xee   :  { %499 = vmatpush.msra.mxu2 %v460_v47 }
  0xef   :  { %631 = vmatpush.msra.mxu1 %v610_v62  ;;  %589 = vmatpush.msra.mxu0 %v553_v21 }
  0xf0   :  { %500 = vmatpush.msra.mxu2 %v459_v49 }
  0xf1   :  { %632 = vmatpush.msra.mxu1 %v609_v45  ;;  %590 = vmatpush.msra.mxu0 %v552_v10 }
  0xf2   :  { %861 = vmatmul.msk.f32.gmra.mxu0 %vm385_vm7, %v383_v44  ;;  %501 = vmatpush.msra.mxu2 %v458_v50 }
  0xf3   :  { %633 = vmatpush.msra.mxu1 %v608_v13  ;;  %591 = vmatpush.msra.mxu0 %v551_v17 }
  0xf4   :  { %865 = vmatmul.msk.f32.gmra.mxu1 %vm385_vm7, %v383_v44  ;;  %502 = vmatpush.msra.mxu2 %v457_v54 }
  0xf5   :  { %634 = vmatpush.msra.mxu1 %v607_v46  ;;  %592 = vmatpush.msra.mxu0 %v550_v12 }
  0xf6   :  { %503 = vmatpush.msra.mxu2 %v456_v11  ;;  %v1540_v11 = vld [vmem:[%s1604_s9] ss:$0 sm:$0xff] }
  0xf7   :  { %635 = vmatpush.msra.mxu1 %v606_v23 }
  0xfa   :  { %862 = vmatmul.msk.f32.gmra.mxu0 %vm385_vm7, %v384_v51 }
  0xfc   :  { %866 = vmatmul.msk.f32.gmra.mxu1 %vm385_vm7, %v384_v51 }
 0x15f   :  { %v415_v14 = vpop.f32.mrf.mxu0 }
 0x160   :  { %504 = vmatmul.f32.vlgmr.msra.gmra.mxu2 %v415_v14 }
 0x161   :  { %v444_v16 = vpop.f32.mrf.mxu1 }
 0x162   :  { %867 = vmatmul.msk.f32.vlgmr.msra.gmra.mxu3 %vm385_vm7, %v444_v16 }
 0x167   :  { %v418_v1 = vpop.f32.mrf.mxu0 }
 0x168   :  { %507 = vmatmul.f32.gmra.mxu2 %v418_v1 }
 0x169   :  { %v447_v63 = vpop.f32.mrf.mxu1 }
 0x16a   :  { %868 = vmatmul.msk.f32.gmra.mxu3 %vm385_vm7, %v447_v63 }
 0x16f   :  { %v421_v4 = vpop.f32.mrf.mxu0 }
 0x170   :  { %510 = vmatmul.f32.gmra.mxu2 %v421_v4 }
 0x171   :  { %v450_v5 = vpop.f32.mrf.mxu1 }
 0x172   :  { %869 = vmatmul.msk.f32.gmra.mxu3 %vm385_vm7, %v450_v5 }
 0x177   :  { %v424_v8 = vpop.f32.mrf.mxu0 }
 0x178   :  { %513 = vmatmul.f32.gmra.mxu2 %v424_v8 }
 0x179   :  { %v453_v48 = vpop.f32.mrf.mxu1 }
 0x17a   :  { %870 = vmatmul.msk.f32.gmra.mxu3 %vm385_vm7, %v453_v48 }
 0x1e3   :  { %v505_v15 = vpop.f32.mrf.mxu2 }
 0x1e5   :  { %v534_v2 = vpop.f32.mrf.mxu3 }
 0x1e6   :  { %v535_v3 = vadd.f32 %v534_v2, %v505_v15 }
 0x1e8   :  { %v546_v0 = vmax.f32 %v535_v3, 0.0 }
 0x1ea   :  { %875 = vmatmul.msk.f32.vlgmr.msra.gmra.mxu1 %vm564_vm14, %v546_v0  ;;  %871 = vmatmul.msk.f32.vlgmr.msra.gmra.mxu0 %vm564_vm14, %v546_v0 }
 0x1eb   :  { %v508_v53 = vpop.f32.mrf.mxu2 }
 0x1ed   :  { %v537_v39 = vpop.f32.mrf.mxu3 }
 0x1ee   :  { %v538_v57 = vadd.f32 %v537_v39, %v508_v53 }
 0x1f0   :  { %v547_v24 = vmax.f32 %v538_v57, 0.0 }
 0x1f2   :  { %876 = vmatmul.msk.f32.gmra.mxu1 %vm564_vm14, %v547_v24  ;;  %872 = vmatmul.msk.f32.gmra.mxu0 %vm564_vm14, %v547_v24 }
 0x1f3   :  { %v511_v20 = vpop.f32.mrf.mxu2 }
 0x1f5   :  { %v540_v27 = vpop.f32.mrf.mxu3 }
 0x1f6   :  { %v541_v40 = vadd.f32 %v540_v27, %v511_v20 }
 0x1f8   :  { %v548_v28 = vmax.f32 %v541_v40, 0.0 }
 0x1fa   :  { %877 = vmatmul.msk.f32.gmra.mxu1 %vm564_vm14, %v548_v28  ;;  %873 = vmatmul.msk.f32.gmra.mxu0 %vm564_vm14, %v548_v28 }
 0x1fb   :  { %v514_v25 = vpop.f32.mrf.mxu2 }
 0x1fd   :  { %v543_v6 = vpop.f32.mrf.mxu3 }
 0x1fe   :  { %v544_v18 = vadd.f32 %v543_v6, %v514_v25 }
 0x200   :  { %v549_v26 = vmax.f32 %v544_v18, 0.0 }
 0x202   :  { %878 = vmatmul.msk.f32.gmra.mxu1 %vm564_vm14, %v549_v26  ;;  %874 = vmatmul.msk.f32.gmra.mxu0 %vm564_vm14, %v549_v26 }
 0x267   :  { %v637_v22 = vpop.f32.mrf.mxu1  ;;  %v594_v50 = vpop.f32.mrf.mxu0 }
 0x268   :  { %v638_v29 = vadd.f32 %v899_v19, %v637_v22  ;;  %v595_v61 = vadd.f32 %v1540_v11, %v594_v50 }
 0x26a   :  { %v879_v30 = vmul.f32 -1.442695, %v638_v29 }
 0x26c   :  { %933 = vpow2.f32 %v879_v30 }
 0x26f   :  { %v640_v32 = vpop.f32.mrf.mxu1  ;;  %v597_v4 = vpop.f32.mrf.mxu0 }
 0x270   :  { %v641_v31 = vadd.f32 %v899_v19, %v640_v32  ;;  %v598_v12 = vadd.f32 %v1540_v11, %v597_v4 }
 0x272   :  { %v934_v33 = vpop.eup %933  ;;  %v880_v38 = vmul.f32 -1.442695, %v641_v31 }
 0x273   :  { %v661_v41 = vadd.f32 1.0, %v934_v33 }
 0x274   :  { %935 = vpow2.f32 %v880_v38 }
 0x275   :  { %937 = vrcp.f32 %v661_v41  ;;  %v676_v55 = vand.u32 2147483648, %v661_v41  ;;  %v674_v59 = vand.u32 2147483647, %v661_v41  ;;  %vm670_vm2 = vweird.f32 %v661_v41 }
 0x277   :  { %v643_v42 = vpop.f32.mrf.mxu1  ;;  %v677_v16 = vor.u32 1.1754944e-38, %v676_v55  ;;  %vm675_vm12 = vcmp.eq.f32.partialorder %v674_v59, 8.507059e+37  ;;  %v600_v39 = vpop.f32.mrf.mxu0 }
 0x278   :  { %v644_v43 = vadd.f32 %v899_v19, %v643_v42  ;;  %v601_v18 = vadd.f32 %v1540_v11, %v600_v39  ;;  %v793_v39 = vld [vmem:[%s1606_s12] sm:$0xff] }
 0x27a   :  { %v936_v44 = vpop.eup %935  ;;  %v881_v34 = vmul.f32 -1.442695, %v644_v43 }
 0x27b   :  { %v938_v47 = vpop.eup %937  ;;  %v662_v49 = vadd.f32 1.0, %v936_v44 }
 0x27c   :  { %v666_v51 = vmul.f32 %v938_v47, %v661_v41  ;;  %939 = vpow2.f32 %v881_v34  ;;  %vm671_vm1 = vweird.f32 %v938_v47 }
 0x27d   :  { %941 = vrcp.f32 %v662_v49  ;;  %vm672_vm8 = vmor %vm670_vm2, %vm671_vm1  ;;  %v691_v48 = vand.u32 2147483648, %v662_v49  ;;  %v689_v46 = vand.u32 2147483647, %v662_v49  ;;  %vm685_vm9 = vweird.f32 %v662_v49 }
 0x27e   :  { %v667_v54 = vsub.f32 1.0, %v666_v51 }
 0x27f   :  { %v646_v56 = vpop.f32.mrf.mxu1  ;;  %v692_v10 = vor.u32 1.1754944e-38, %v691_v48  ;;  %vm690_vm11 = vcmp.eq.f32.partialorder %v689_v46, 8.507059e+37  ;;  %v603_v41 = vpop.f32.mrf.mxu0 }
 0x280   :  { %v668_v36 = vmul.f32 %v938_v47, %v667_v54  ;;  %v647_v35 = vadd.f32 %v899_v19, %v646_v56  ;;  %v604_v34 = vadd.f32 %v1540_v11, %v603_v41 }
 0x282   :  { %v940_v58 = vpop.eup %939  ;;  %v669_v60 = vadd.f32 %v938_v47, %v668_v36  ;;  %v882_v37 = vmul.f32 -1.442695, %v647_v35 }
 0x283   :  { %v942_v14 = vpop.eup %941  ;;  %v663_v62 = vadd.f32 1.0, %v940_v58 }
 0x284   :  { %v673_v45 = vsel %vm672_vm8, %v938_v47, %v669_v60  ;;  %v681_v1 = vmul.f32 %v942_v14, %v662_v49  ;;  %943 = vpow2.f32 %v882_v37  ;;  %vm686_vm4 = vweird.f32 %v942_v14 }
 0x285   :  { %v678_v63 = vsel %vm675_vm12, %v677_v16, %v673_v45  ;;  %945 = vrcp.f32 %v663_v62  ;;  %vm687_vm15 = vmor %vm685_vm9, %vm686_vm4  ;;  %v706_v57 = vand.u32 2147483648, %v663_v62  ;;  %v704_v27 = vand.u32 2147483647, %v663_v62 }
 0x286   :  { %v725_v5 = vadd.f32 %v678_v63, %v595_v61  ;;  %v682_v8 = vsub.f32 1.0, %v681_v1  ;;  %vm700_vm5 = vweird.f32 %v663_v62  ;;  %v953_v16 = vmov 0  }
 0x287   :  { %v707_v6 = vor.u32 1.1754944e-38, %v706_v57  ;;  %vm705_vm6 = vcmp.eq.f32.partialorder %v704_v27, 8.507059e+37  ;;  %896 = vset.pattern.permute.xlu2 %v953_v16  ;;  %898 = vset.pattern.permute.xlu1 %v953_v16 }
 0x288   :  { %v1543_v13 = vmax.f32 %v725_v5, 0.0  ;;  %v683_v7 = vmul.f32 %v942_v14, %v682_v8  ;;  %897 = vset.pattern.permute.xlu0 %v953_v16 }
 0x28a   :  { %v944_v9 = vpop.eup %943  ;;  %v684_v23 = vadd.f32 %v942_v14, %v683_v7  ;;  %733 = vadd.xlane.f32.xlu0 %v1543_v13  ;;  %v741_v52 = vmul.f32 %v1543_v13, %v1543_v13 }
 0x28b   :  { %v946_v21 = vpop.eup %945  ;;  %v664_v17 = vadd.f32 1.0, %v944_v9 }
 0x28c   :  { %v688_v15 = vsel %vm687_vm15, %v942_v14, %v684_v23  ;;  %v696_v2 = vmul.f32 %v946_v21, %v663_v62  ;;  %745 = vadd.xlane.f32.xlu2 %v741_v52  ;;  %vm701_vm0 = vweird.f32 %v946_v21 }
 0x28d   :  { %v693_v3 = vsel %vm690_vm11, %v692_v10, %v688_v15  ;;  %947 = vrcp.f32 %v664_v17  ;;  %vm702_vm3 = vmor %vm700_vm5, %vm701_vm0  ;;  %v721_v32 = vand.u32 2147483648, %v664_v17  ;;  %v719_v38 = vand.u32 2147483647, %v664_v17 }
 0x28e   :  { %v726_v0 = vadd.f32 %v693_v3, %v598_v12  ;;  %v697_v53 = vsub.f32 1.0, %v696_v2  ;;  %vm715_vm13 = vweird.f32 %v664_v17  ;;  %v789_v3 = vld [vmem:[%s1605_s11] sm:$0xff] }
 0x28f   :  { %v722_v44 = vor.u32 1.1754944e-38, %v721_v32  ;;  %vm720_vm14 = vcmp.eq.f32.partialorder %v719_v38, 8.507059e+37 }
 0x290   :  { %v1549_v24 = vmax.f32 %v726_v0, 0.0  ;;  %v698_v20 = vmul.f32 %v946_v21, %v697_v53 }
 0x292   :  { %v699_v40 = vadd.f32 %v946_v21, %v698_v20  ;;  %735 = vadd.xlane.f32.xlu0 %v1549_v24  ;;  %v742_v28 = vmul.f32 %v1549_v24, %v1549_v24 }
 0x293   :  { %v948_v25 = vpop.eup %947 }
 0x294   :  { %v703_v26 = vsel %vm702_vm3, %v946_v21, %v699_v40  ;;  %v711_v19 = vmul.f32 %v948_v25, %v664_v17  ;;  %747 = vadd.xlane.f32.xlu2 %v742_v28  ;;  %vm716_vm10 = vweird.f32 %v948_v25 }
 0x295   :  { %v708_v22 = vsel %vm705_vm6, %v707_v6, %v703_v26  ;;  %vm717_vm7 = vmor %vm715_vm13, %vm716_vm10  ;;  %v790_v26 = vld [vmem:[%s1605_s11 + $0x8] sm:$0xff] }
 0x296   :  { %v727_v29 = vadd.f32 %v708_v22, %v601_v18  ;;  %v712_v30 = vsub.f32 1.0, %v711_v19 }
 0x298   :  { %v1555_v31 = vmax.f32 %v727_v29, 0.0  ;;  %v713_v33 = vmul.f32 %v948_v25, %v712_v30  ;;  %v794_v29 = vld [vmem:[%s1606_s12 + $0x8] sm:$0xff] }
 0x29a   :  { %v714_v42 = vadd.f32 %v948_v25, %v713_v33  ;;  %737 = vadd.xlane.f32.xlu1 %v1555_v31  ;;  %v743_v43 = vmul.f32 %v1555_v31, %v1555_v31 }
 0x29c   :  { %v718_v47 = vsel %vm717_vm7, %v948_v25, %v714_v42  ;;  %749 = vadd.xlane.f32.xlu0 %v743_v43 }
 0x29d   :  { %v723_v49 = vsel %vm720_vm14, %v722_v44, %v718_v47 }
 0x29e   :  { %v728_v50 = vadd.f32 %v723_v49, %v604_v34 }
 0x2a0   :  { %v1561_v51 = vmax.f32 %v728_v50, 0.0 }
 0x2a2   :  { %739 = vadd.xlane.f32.xlu1 %v1561_v51  ;;  %v744_v54 = vmul.f32 %v1561_v51, %v1561_v51 }
 0x2aa   :  { %751 = vadd.xlane.f32.xlu1 %v744_v54 }
 0x2fd   :  { %v734_v55 = vpop.xlane.xlu0 %733 }
 0x2ff   :  { %v746_v35 = vpop.xlane.xlu2 %745 }
 0x305   :  { %v736_v56 = vpop.xlane.xlu0 %735 }
 0x307   :  { %v748_v5 = vpop.xlane.xlu2 %747 }
 0x30d   :  { %v738_v36 = vpop.xlane.xlu1 %737 }
 0x30e   :  { %v753_v59 = vadd.f32 %v738_v36, %v734_v55 }
 0x30f   :  { %v750_v58 = vpop.xlane.xlu0 %749 }
 0x310   :  { %v757_v11 = vmul.f32 0.00390625, %v753_v59  ;;  %v755_v60 = vadd.f32 %v750_v58, %v746_v35 }
 0x312   :  { %v761_v37 = vmul.f32 %v757_v11, %v757_v11  ;;  %v759_v14 = vmul.f32 0.00390625, %v755_v60 }
 0x314   :  { %v763_v61 = vsub.f32 %v759_v14, %v761_v37 }
 0x315   :  { %v740_v62 = vpop.xlane.xlu1 %739 }
 0x316   :  { %v765_v45 = vmax.f32 %v763_v61, 0.0  ;;  %v754_v63 = vadd.f32 %v740_v62, %v736_v56 }
 0x318   :  { %v767_v1 = vadd.f32 1e-05, %v765_v45  ;;  %v758_v4 = vmul.f32 0.00390625, %v754_v63 }
 0x31a   :  { %949 = vrsqrt.f32 %v767_v1  ;;  %v762_v46 = vmul.f32 %v758_v4, %v758_v4  ;;  %vm775_vm2 = vweird.f32 %v767_v1 }
 0x31d   :  { %v752_v8 = vpop.xlane.xlu1 %751 }
 0x31e   :  { %v756_v48 = vadd.f32 %v752_v8, %v748_v5 }
 0x320   :  { %v950_v7 = vpop.eup %949  ;;  %v760_v9 = vmul.f32 0.00390625, %v756_v48 }
 0x321   :  { %v770_v23 = vmul.f32 %v950_v7, %v767_v1  ;;  %vm776_vm1 = vweird.f32 %v950_v7 }
 0x322   :  { %v764_v52 = vsub.f32 %v760_v9, %v762_v46  ;;  %vm777_vm8 = vmor %vm775_vm2, %vm776_vm1 }
 0x323   :  { %v771_v21 = vmul.f32 %v950_v7, %v770_v23 }
 0x324   :  { %v766_v10 = vmax.f32 %v764_v52, 0.0 }
 0x325   :  { %v772_v17 = vmul.f32 0.5, %v771_v21 }
 0x326   :  { %v768_v12 = vadd.f32 1e-05, %v766_v10 }
 0x327   :  { %v773_v15 = vsub.f32 1.5, %v772_v17 }
 0x328   :  { %951 = vrsqrt.f32 %v768_v12  ;;  %vm785_vm4 = vweird.f32 %v768_v12 }
 0x329   :  { %v774_v2 = vmul.f32 %v950_v7, %v773_v15 }
 0x32b   :  { %v778_v0 = vsel %vm777_vm8, %v950_v7, %v774_v2 }
 0x32c   :  { %v791_v53 = vmul.f32 %v789_v3, %v778_v0 }
 0x32e   :  { %v952_v57 = vpop.eup %951  ;;  %801 = vperm.xlu2 %896, %v791_v53   ;;  %v795_v20 = vmul.f32 %v791_v53, %v757_v11 }
 0x32f   :  { %v780_v27 = vmul.f32 %v952_v57, %v768_v12  ;;  %vm786_vm12 = vweird.f32 %v952_v57 }
 0x330   :  { %v797_v40 = vsub.f32 %v793_v39, %v795_v20  ;;  %vm787_vm9 = vmor %vm785_vm4, %vm786_vm12 }
 0x331   :  { %v781_v28 = vmul.f32 %v952_v57, %v780_v27 }
 0x332   :  { %813 = vperm.xlu1 %898, %v797_v40  }
 0x333   :  { %v782_v25 = vmul.f32 0.5, %v781_v28 }
 0x335   :  { %v783_v6 = vsub.f32 1.5, %v782_v25 }
 0x337   :  { %v784_v18 = vmul.f32 %v952_v57, %v783_v6 }
 0x339   :  { %v788_v19 = vsel %vm787_vm9, %v952_v57, %v784_v18 }
 0x33a   :  { %v792_v22 = vmul.f32 %v790_v26, %v788_v19 }
 0x33c   :  { %806 = vperm.xlu0 %897, %v792_v22   ;;  %v796_v30 = vmul.f32 %v792_v22, %v758_v4 }
 0x33e   :  { %v798_v32 = vsub.f32 %v794_v29, %v796_v30 }
 0x340   :  { %818 = vperm.xlu2 %896, %v798_v32  }
 0x388   :  { %v802_v33 = vpop.permute.xlu2 %801 }
 0x389   :  { %v809_v38 = vmul.f32 %v802_v33, %v1543_v13  ;;  %v825_v41 = vmul.f32 %v802_v33, %v1555_v31 }
 0x39a   :  { %v819_v50 = vpop.permute.xlu2 %818 }
 0x3a4   :  { %v814_v42 = vpop.permute.xlu1 %813 }
 0x3a5   :  { %v821_v43 = vadd.f32 %v814_v42, %v809_v38  ;;  %v827_v44 = vadd.f32 %v825_v41, %v814_v42 }
 0x3a7   :  { %823 = vst [vmem:[%s1607_s13] sm:$0xff] %v821_v43 }
 0x3a8   :  { %829 = vst [vmem:[%s1607_s13 + $0x10] sm:$0xff] %v827_v44 }
 0x3ae   :  { %v807_v34 = vpop.permute.xlu0 %806 }
 0x3af   :  { %v810_v47 = vmul.f32 %v807_v34, %v1549_v24  ;;  %v826_v49 = vmul.f32 %v807_v34, %v1561_v51 }
 0x3b1   :  { %v822_v13 = vadd.f32 %v819_v50, %v810_v47  ;;  %v828_v54 = vadd.f32 %v826_v49, %v819_v50 }
 0x3b3   :  { %824 = vst [vmem:[%s1607_s13 + $0x8] sm:$0xff] %v822_v13 }
 0x3b4   :  { %830 = vst [vmem:[%s1607_s13 + $0x18] sm:$0xff] %v828_v54 }

</bundles_post_ra>
